<compile_context>
chip_gen: v7x
topology: tpu7x:2x2x1
jax: 0.10.0
libtpu: 0.0.40
codegen_flags: <defaults>
</compile_context>

<pallas_src>
import jax
import jax.numpy as jnp
import numpy as np
from jax import lax
from jax.experimental import pallas as pl
from jax.experimental.pallas import tpu as pltpu

BRANCHES = (
    # (name, in_features, out_features) — matches the nn.Sequential defs in the module
    ("position",        4, 8),
    ("dist_to_target",  1, 2),
    ("touch",           2, 4),
    ("target_position", 2, 4),
    ("velocity",        3, 6),
)
IN_DIM = sum(d for _, d, _ in BRANCHES)     # 4 + 1 + 2 + 2 + 3 = 12
IN_PAD = 16                                 # input features zero-padded to a sublane multiple
OUT_DIM = sum(d for _, _, d in BRANCHES)    # 8 + 2 + 4 + 4 + 6 = 24
LN_EPS = 1e-5                               # PyTorch nn.LayerNorm default eps

# Column layout of the packed feature-major parameter buffer (OUT_DIM, PARAM_COLS).
C_W1 = 0                        # cols  0..15 : block-diag W1^T (24 x 16, K zero-padded 12->16)
C_W2 = C_W1 + IN_PAD            # cols 16..39 : block-diag W2^T (24 x 24)
C_M = C_W2 + OUT_DIM            # cols 40..63 : segment-averaging matrix M (24 x 24)
C_B1 = C_M + OUT_DIM            # col  64     : bias1
C_B2 = C_B1 + 1                 # col  65     : bias2
C_G = C_B2 + 1                  # col  66     : LayerNorm gamma
C_BETA = C_G + 1                # col  67     : LayerNorm beta
PARAM_COLS = C_BETA + 1         # 68

BATCH_BLOCK_MAX = 4096          # max batch rows (lanes) per grid step for large batches


def _finger_kernel(x_ref, p_ref, out_ref):
    """Fused 5-branch encoder, feature-major (batch on lanes): MXU contractions + VPU LN."""
    x = x_ref[...]                            # (IN_PAD, bb) f32, batch on lanes
    w1 = p_ref[:, C_W1:C_W1 + IN_PAD]         # (24, 16) block-diagonal W1^T
    w2 = p_ref[:, C_W2:C_W2 + OUT_DIM]        # (24, 24) block-diagonal W2^T
    m = p_ref[:, C_M:C_M + OUT_DIM]           # (24, 24) segment-averaging matrix
    b1 = p_ref[:, C_B1:C_B1 + 1]              # (24, 1) — broadcasts along lanes
    b2 = p_ref[:, C_B2:C_B2 + 1]
    g = p_ref[:, C_G:C_G + 1]
    beta = p_ref[:, C_BETA:C_BETA + 1]

    hp = lax.Precision.HIGHEST                # keep f32 accuracy on the MXU passes

    # Linear(12->24, block-diag) + ReLU, on the MXU with batch as the large N dim.
    h = jnp.maximum(
        jnp.dot(w1, x, precision=hp, preferred_element_type=jnp.float32) + b1, 0.0)
    # Linear(24->24, block-diag)
    y = jnp.dot(w2, h, precision=hp, preferred_element_type=jnp.float32) + b2
    # Segmented LayerNorm: per-segment mean via M; var = E[y^2] - mu^2 (one M pass saved).
    mu = jnp.dot(m, y, precision=hp, preferred_element_type=jnp.float32)
    ey2 = jnp.dot(m, y * y, precision=hp, preferred_element_type=jnp.float32)
    var = jnp.maximum(ey2 - mu * mu, 0.0)
    y_hat = (y - mu) * lax.rsqrt(var + LN_EPS)
    # Single lane-dense store of the already-concatenated (24, bb) result.
    out_ref[...] = (y_hat * g + beta).astype(out_ref.dtype)


def pack_params(params):
    """Pack per-branch [w1, b1, w2, b2, gamma, beta] into one feature-major (24, 68) buffer."""
    w1_fm = np.zeros((OUT_DIM, IN_PAD), np.float32)
    w2_fm = np.zeros((OUT_DIM, OUT_DIM), np.float32)
    b1s, b2s, gs, betas = [], [], [], []
    in_off = out_off = 0
    for name, din, dout in BRANCHES:
        w1, b1, w2, b2, gamma, beta = (np.asarray(t, np.float32) for t in params[name])
        # Kernel computes W_fm @ x_t (feature-major), so W_fm blocks are the transposes.
        w1_fm[out_off:out_off + dout, in_off:in_off + din] = w1.T
        w2_fm[out_off:out_off + dout, out_off:out_off + dout] = w2.T
        b1s.append(b1.reshape(-1))
        b2s.append(b2.reshape(-1))
        gs.append(gamma.reshape(-1))
        betas.append(beta.reshape(-1))
        in_off += din
        out_off += dout

    # Segment-averaging matrix: M[i, j] = 1/d_seg(i) if seg(i) == seg(j) else 0.
    seg_id = np.concatenate([np.full(d, i) for i, (_, _, d) in enumerate(BRANCHES)])
    seg_sz = np.concatenate([np.full(d, d) for _, _, d in BRANCHES]).astype(np.float32)
    m = (seg_id[:, None] == seg_id[None, :]).astype(np.float32) / seg_sz[:, None]

    packed = np.concatenate(
        [w1_fm, w2_fm, m,
         np.concatenate(b1s)[:, None], np.concatenate(b2s)[:, None],
         np.concatenate(gs)[:, None], np.concatenate(betas)[:, None]],
        axis=1).astype(np.float32)
    assert packed.shape == (OUT_DIM, PARAM_COLS)
    return jnp.asarray(packed)


def _concat_inputs_t(x):
    """Concat the 5 branches, zero-pad features 12->16, transpose to (16, batch)."""
    dist = x["dist_to_target"]
    if dist.ndim == 1:                        # matches the .dim() == 1 unsqueeze(-1) branch
        dist = dist[:, None]
    cat = jnp.concatenate(
        [x["position"], dist, x["touch"], x["target_position"], x["velocity"]],
        axis=-1).astype(jnp.float32)          # (batch, 12)
    cat = jnp.pad(cat, ((0, 0), (0, IN_PAD - IN_DIM)))
    return cat.T                              # (16, batch) — feature-major, batch on lanes


def _round_up(v, m):
    return ((v + m - 1) // m) * m


def finger_turn_hard_forward(x: dict, packed_params):
    """Pallas forward. x: dict of (batch, din) arrays; packed_params: (24, 68) f32.

    Returns (batch, 24) to match the PyTorch module's output layout.
    """
    x_t = _concat_inputs_t(x)
    batch = x_t.shape[1]

    # Small batch: one whole-array block.  Large batch: >=2 lane-dense (multiple-of-128)
    # blocks so v7x's two TensorCores split the work; capped to amortize per-step overhead.
    if batch <= 256:
        bb = batch
    else:
        bb = min(BATCH_BLOCK_MAX, _round_up(pl.cdiv(batch, 2), 128))
    grid = (pl.cdiv(batch, bb),)

    cost = pl.CostEstimate(
        flops=int(batch * 2 * OUT_DIM * (IN_PAD + 3 * OUT_DIM) + batch * 12 * OUT_DIM),
        transcendentals=int(batch * OUT_DIM),
        bytes_accessed=int(batch * (IN_PAD + OUT_DIM) * 4 + OUT_DIM * PARAM_COLS * 4),
    )

    out_t = pl.pallas_call(
        _finger_kernel,
        out_shape=jax.ShapeDtypeStruct((OUT_DIM, batch), jnp.float32),
        grid=grid,
        in_specs=[
            pl.BlockSpec((IN_PAD, bb), lambda i: (0, i)),
            pl.BlockSpec((OUT_DIM, PARAM_COLS), lambda i: (0, 0)),
        ],
        out_specs=pl.BlockSpec((OUT_DIM, bb), lambda i: (0, i)),
        compiler_params=pltpu.CompilerParams(dimension_semantics=("parallel",)),
        cost_estimate=cost,
    )(x_t, packed_params)

    return out_t.T                            # (batch, 24) — module output layout


def init_params(key):
    """Deterministic synthetic parameter init (shapes from the module's __init__)."""
    params = {}
    for name, din, dout in BRANCHES:
        key, k0, k1, k2, k3, k4, k5 = jax.random.split(key, 7)
        # Stored as (din, dout) so the math is x @ W (== x @ W_pt.T semantics).
        w1 = 0.3 * jax.random.normal(k0, (din, dout), jnp.float32)
        b1 = 0.1 * jax.random.normal(k1, (1, dout), jnp.float32)
        w2 = 0.3 * jax.random.normal(k2, (dout, dout), jnp.float32)
        b2 = 0.1 * jax.random.normal(k3, (1, dout), jnp.float32)
        gamma = 1.0 + 0.1 * jax.random.normal(k4, (1, dout), jnp.float32)
        beta = 0.1 * jax.random.normal(k5, (1, dout), jnp.float32)
        params[name] = [w1, b1, w2, b2, gamma, beta]
    return params


def reference_forward(x, params):
    """Pure-JAX reference mirroring the PyTorch forward semantics (f32-accurate matmuls)."""
    hp = lax.Precision.HIGHEST
    dist = x["dist_to_target"]
    if dist.ndim == 1:
        dist = dist[:, None]
    xs = {"position": x["position"], "dist_to_target": dist, "touch": x["touch"],
          "target_position": x["target_position"], "velocity": x["velocity"]}
    outs = []
    for name, _, _ in BRANCHES:
        w1, b1, w2, b2, g, b = params[name]
        h = jnp.maximum(jnp.dot(xs[name], w1, precision=hp) + b1, 0.0)
        y = jnp.dot(h, w2, precision=hp) + b2
        mu = y.mean(-1, keepdims=True)
        var = ((y - mu) ** 2).mean(-1, keepdims=True)
        outs.append((y - mu) / jnp.sqrt(var + LN_EPS) * g + b)
    return jnp.concatenate(outs, axis=-1)


if __name__ == "__main__":
    key = jax.random.PRNGKey(0)
    key, kp = jax.random.split(key)
    params = init_params(kp)
    packed = pack_params(params)              # pre-pack once; reused across calls

    fwd = jax.jit(finger_turn_hard_forward)

    # batch=8: single whole-array block.  batch=384: exercises the tiled lane-dense path
    # (grid=2, bb=256, partial/masked last block).
    for batch in (8, 384):
        key, k1, k2, k3, k4, k5 = jax.random.split(key, 6)
        x = {
            "position":        jax.random.normal(k1, (batch, 4), jnp.float32),
            "dist_to_target":  jax.random.normal(k2, (batch,), jnp.float32),  # 1-D -> unsqueezed
            "touch":           jax.random.normal(k3, (batch, 2), jnp.float32),
            "target_position": jax.random.normal(k4, (batch, 2), jnp.float32),
            "velocity":        jax.random.normal(k5, (batch, 3), jnp.float32),
        }
        out = jax.block_until_ready(fwd(x, packed))
        ref = reference_forward(x, params)
        assert out.shape == (batch, OUT_DIM), out.shape
        # Tolerance is 1e-4: the kernel uses var = E[y^2] - mu^2 (vs the reference's
        # E[(y-mu)^2]), a tiny, bounded numerics difference.
        assert jnp.allclose(out, ref, atol=1e-4, rtol=1e-4), (
            float(jnp.max(jnp.abs(out - ref))))

    print("KERNEL_OK")
</pallas_src>

<mosaic_0001>
module attributes {stable_mosaic.version = 11 : i64} {
  func.func @_finger_kernel(%arg0: i32, %arg1: memref<16x8xf32, #tpu.memory_space<vmem>>, %arg2: memref<24x68xf32, #tpu.memory_space<vmem>>, %arg3: memref<24x8xf32, #tpu.memory_space<vmem>>) attributes {dimension_semantics = [#tpu.dimension_semantics<parallel>], iteration_bounds = array<i64: 1>, scalar_prefetch = 0 : i64, scratch_operands = 0 : i64, tpu.core_type = #tpu.core_type<tc>, window_params = [{transform_indices = @transform_0, window_bounds = array<i64: 16, 8>}, {pipeline_mode = #tpu.pipeline_mode<synchronous>, transform_indices = @transform_1, window_bounds = array<i64: 24, 68>}, {transform_indices = @transform_2, window_bounds = array<i64: 24, 8>}]} {
    %c0 = arith.constant 0 : index
    %c0_0 = arith.constant 0 : index
    %0 = vector.load %arg1[%c0, %c0_0] : memref<16x8xf32, #tpu.memory_space<vmem>>, vector<16x8xf32>
    %c0_1 = arith.constant 0 : index
    %c0_2 = arith.constant 0 : index
    %1 = vector.load %arg2[%c0_1, %c0_2] : memref<24x68xf32, #tpu.memory_space<vmem>>, vector<24x16xf32>
    %c0_3 = arith.constant 0 : index
    %c16 = arith.constant 16 : index
    %2 = vector.load %arg2[%c0_3, %c16] : memref<24x68xf32, #tpu.memory_space<vmem>>, vector<24x24xf32>
    %c0_4 = arith.constant 0 : index
    %c40 = arith.constant 40 : index
    %3 = vector.load %arg2[%c0_4, %c40] : memref<24x68xf32, #tpu.memory_space<vmem>>, vector<24x24xf32>
    %c0_5 = arith.constant 0 : index
    %c64 = arith.constant 64 : index
    %4 = vector.load %arg2[%c0_5, %c64] : memref<24x68xf32, #tpu.memory_space<vmem>>, vector<24x1xf32>
    %c0_6 = arith.constant 0 : index
    %c65 = arith.constant 65 : index
    %5 = vector.load %arg2[%c0_6, %c65] : memref<24x68xf32, #tpu.memory_space<vmem>>, vector<24x1xf32>
    %c0_7 = arith.constant 0 : index
    %c66 = arith.constant 66 : index
    %6 = vector.load %arg2[%c0_7, %c66] : memref<24x68xf32, #tpu.memory_space<vmem>>, vector<24x1xf32>
    %c0_8 = arith.constant 0 : index
    %c67 = arith.constant 67 : index
    %7 = vector.load %arg2[%c0_8, %c67] : memref<24x68xf32, #tpu.memory_space<vmem>>, vector<24x1xf32>
    %cst = arith.constant dense<0.000000e+00> : vector<24x8xf32>
    %8 = tpu.matmul %1, %0, %cst {dimension_numbers = #tpu.dot_dimension_numbers<[1], [0], [0], [1], [0, 0, 1, 1], [], []>, precision = #tpu.contract_precision<fp32>} : vector<24x16xf32>, vector<16x8xf32>, vector<24x8xf32> -> vector<24x8xf32>
    %9 = vector.broadcast %4 : vector<24x1xf32> to vector<24x8xf32>
    %10 = arith.addf %8, %9 : vector<24x8xf32>
    %cst_9 = arith.constant 0.000000e+00 : f32
    %11 = vector.broadcast %cst_9 : f32 to vector<24x8xf32>
    %12 = arith.maximumf %10, %11 : vector<24x8xf32>
    %cst_10 = arith.constant dense<0.000000e+00> : vector<24x8xf32>
    %13 = tpu.matmul %2, %12, %cst_10 {dimension_numbers = #tpu.dot_dimension_numbers<[1], [0], [0], [1], [0, 0, 1, 1], [], []>, precision = #tpu.contract_precision<fp32>} : vector<24x24xf32>, vector<24x8xf32>, vector<24x8xf32> -> vector<24x8xf32>
    %14 = vector.broadcast %5 : vector<24x1xf32> to vector<24x8xf32>
    %15 = arith.addf %13, %14 : vector<24x8xf32>
    %cst_11 = arith.constant dense<0.000000e+00> : vector<24x8xf32>
    %16 = tpu.matmul %3, %15, %cst_11 {dimension_numbers = #tpu.dot_dimension_numbers<[1], [0], [0], [1], [0, 0, 1, 1], [], []>, precision = #tpu.contract_precision<fp32>} : vector<24x24xf32>, vector<24x8xf32>, vector<24x8xf32> -> vector<24x8xf32>
    %17 = arith.mulf %15, %15 : vector<24x8xf32>
    %cst_12 = arith.constant dense<0.000000e+00> : vector<24x8xf32>
    %18 = tpu.matmul %3, %17, %cst_12 {dimension_numbers = #tpu.dot_dimension_numbers<[1], [0], [0], [1], [0, 0, 1, 1], [], []>, precision = #tpu.contract_precision<fp32>} : vector<24x24xf32>, vector<24x8xf32>, vector<24x8xf32> -> vector<24x8xf32>
    %19 = arith.mulf %16, %16 : vector<24x8xf32>
    %20 = arith.subf %18, %19 : vector<24x8xf32>
    %cst_13 = arith.constant 0.000000e+00 : f32
    %21 = vector.broadcast %cst_13 : f32 to vector<24x8xf32>
    %22 = arith.maximumf %20, %21 : vector<24x8xf32>
    %23 = arith.subf %15, %16 : vector<24x8xf32>
    %cst_14 = arith.constant 9.99999974E-6 : f32
    %24 = vector.broadcast %cst_14 : f32 to vector<24x8xf32>
    %25 = arith.addf %22, %24 : vector<24x8xf32>
    %26 = math.rsqrt %25 : vector<24x8xf32>
    %27 = arith.mulf %23, %26 : vector<24x8xf32>
    %28 = vector.broadcast %6 : vector<24x1xf32> to vector<24x8xf32>
    %29 = arith.mulf %27, %28 : vector<24x8xf32>
    %30 = vector.broadcast %7 : vector<24x1xf32> to vector<24x8xf32>
    %31 = arith.addf %29, %30 : vector<24x8xf32>
    %c0_15 = arith.constant 0 : index
    %c0_16 = arith.constant 0 : index
    %32 = vector.load %arg3[%c0_15, %c0_16] : memref<24x8xf32, #tpu.memory_space<vmem>>, vector<24x8xf32>
    tpu.vector_store %arg3[%c0_15, %c0_16], %31 {strides = array<i32>} : memref<24x8xf32, #tpu.memory_space<vmem>>, vector<24x8xf32>,
    return
  }
  func.func @transform_0(%arg0: i32) -> (i32, i32) {
    %c0_i32 = arith.constant 0 : i32
    %c0_i32_0 = arith.constant 0 : i32
    return %c0_i32, %arg0 : i32, i32
  }
  func.func @transform_1(%arg0: i32) -> (i32, i32) {
    %c0_i32 = arith.constant 0 : i32
    %c0_i32_0 = arith.constant 0 : i32
    %c0_i32_1 = arith.constant 0 : i32
    return %c0_i32, %c0_i32_0 : i32, i32
  }
  func.func @transform_2(%arg0: i32) -> (i32, i32) {
    %c0_i32 = arith.constant 0 : i32
    %c0_i32_0 = arith.constant 0 : i32
    return %c0_i32, %arg0 : i32, i32
  }
}

</mosaic_0001>

<bundles_post_ra>
// kernel: finger_turn_hard_forward.1
= control target key start
LH: loop header
LB: loop body
LE: loop exit
PB: predicated region body
PF: predicated region fallthrough
CT: control target
= control target key end

     0   :  { %vm31_vm0 = vcmask 130048   ;;  %v3066_v0 = vmov 0.0|0.0   ;;  %vm3067_vm1 = vmmov 0   ;;  %v3068_v3 = vmov 0.0   ;;  %s3072_s18 = smov 88   ;;  %s3564_s0 = inlined_call_operand.vmem [shape: f32[16,8], index: 0, kind: input, shape index: {}]   ;;  %s3565_s1 = inlined_call_operand.vmem [shape: f32[24,68], index: 1, kind: input, shape index: {}]   ;;  %s3566_s2 = inlined_call_operand.vmem [shape: f32[24,8], index: 2, kind: output, shape index: {}]  }
   0x1   :  { %2845 = vmatprep.subr.bf16.mxu0 %v3066_v0  ;;  %v11_v1 = vld [vmem:[%s3564_s0] sm:$0xff]  ;;  %v12_v2 = vld [vmem:[%s3564_s0 + $0x8] sm:$0xff]  ;;  %2501 = vmatprep.mubr.msk.f32.mxu0 %vm3067_vm1, %v3068_v3  ;;  %v3114_v9 = vld [vmem:[%s3565_s1 + $0x10] sm:$0xff]  ;;  %v3069_v10 = vmov 64   ;;  %v3071_v40 = vmov 65   ;;  %vm604_vm2 = vcmask 195584  }
   0x2   :  { %v3102_v4 = vld [vmem:[%s3565_s1] sm:$0xff]  ;;  %v39_v5 = vand.u32 4294901760, %v11_v1  ;;  %v42_v6 = vand.u32 4294901760, %v12_v2  ;;  %v3109_v8 = vld [vmem:[%s3565_s1 + $0x8] sm:$0xff]  ;;  %3052 = vset.pattern.permute.xlu0 %v3069_v10  ;;  %3053 = vset.pattern.permute.xlu1 %v3069_v10  ;;  %v36_v13 = vsel %vm31_vm0, %v3114_v9, 0  ;;  %s3070_s1 = smov 112  }
   0x3   :  { %v32_v7 = vsel %vm31_vm0, %v3102_v4, 0  ;;  %v34_v12 = vsel %vm31_vm0, %v3109_v8, 0  ;;  %18 = vperm.xlu0 %3052, %v3102_v4   ;;  %28 = vperm.xlu1 %3053, %v3114_v9   ;;  %v3132_v19 = vand.u32 4294901760, %v36_v13  ;;  %vm2351_vm3 = vcmask 64512  }
   0x4   :  { %v3116_v11 = vand.u32 4294901760, %v32_v7  ;;  %v3124_v14 = vpack.c.bf16 %v42_v6, %v39_v5  ;;  %v137_v15 = vsub.f32 %v11_v1, %v39_v5  ;;  %v144_v16 = vsub.f32 %v12_v2, %v42_v6  ;;  %2863 = vmatprep.subr.bf16.mxu1 %v3066_v0  ;;  %2581 = vmatprep.mubr.msk.f32.mxu1 %vm3067_vm1, %v3068_v3 }
   0x5   :  { %v3126_v17 = vand.u32 4294901760, %v34_v12  ;;  %v126_v24 = vsub.f32 %v36_v13, %v3132_v19 }
   0x6   :  { %v106_v18 = vsub.f32 %v32_v7, %v3116_v11  ;;  %2847 = vmatpush3.bf16.msra.mxu0 %v3124_v14  ;;  %v138_v21 = vand.u32 4294901760, %v137_v15  ;;  %v145_v22 = vand.u32 4294901760, %v144_v16  ;;  %v2852_v38 = vpack.c.bf16 %v144_v16, %v137_v15 }
   0x7   :  { %v116_v20 = vsub.f32 %v34_v12, %v3126_v17  ;;  %2848 = vmatprep.subr.bf16.mxu0 %v3066_v0  ;;  %23 = vperm.xlu0 %3052, %v3109_v8   ;;  %v127_v29 = vand.u32 4294901760, %v126_v24 }
   0x8   :  { %v107_v23 = vand.u32 4294901760, %v106_v18  ;;  %v139_v26 = vsub.f32 %v137_v15, %v138_v21  ;;  %v146_v27 = vsub.f32 %v144_v16, %v145_v22  ;;  %598 = vrot.lane.b32.xlu1 %v3102_v4, %s3070_s1  ;;  %v2858_v39 = vpack.c.bf16 %v145_v22, %v138_v21 }
   0x9   :  { %v117_v25 = vand.u32 4294901760, %v116_v20  ;;  %v128_v36 = vsub.f32 %v126_v24, %v127_v29  ;;  %3055 = vset.pattern.permute.xlu1 %v3071_v40 }
   0xa   :  { %v108_v28 = vsub.f32 %v106_v18, %v107_v23  ;;  %v140_v31 = vand.u32 4294901760, %v139_v26  ;;  %v147_v32 = vand.u32 4294901760, %v146_v27 }
   0xb   :  { %v118_v30 = vsub.f32 %v116_v20, %v117_v25  ;;  %600 = vrot.lane.b32.xlu0 %v3109_v8, %s3070_s1  ;;  %v129_v37 = vand.u32 4294901760, %v128_v36 }
   0xc   :  { %v109_v33 = vand.u32 4294901760, %v108_v28  ;;  %v2849_v34 = vpack.c.bf16 %v147_v32, %v140_v31  ;;  %602 = vrot.lane.b32.xlu1 %v3114_v9, %s3070_s1  ;;  %3054 = vset.pattern.permute.xlu0 %v3071_v40 }
   0xd   :  { %v119_v35 = vand.u32 4294901760, %v118_v30 }
   0xe   :  { %2502 = vmatmul.mubr.f32.vlgmr.msra.gmra.mrb[0].mxu0 %v109_v33 }
   0xf   :  { %2504 = vmatprep.mubr.msk.f32.mxu0 %vm3067_vm1, %v3068_v3  ;;  %2850 = vmatpush3.bf16.msra.mxu0 %v2849_v34 }
  0x10   :  { %2851 = vmatprep.subr.bf16.mxu0 %v3066_v0  ;;  %591 = vperm.xlu1 %3055, %v3109_v8  }
  0x11   :  { %587 = vperm.xlu0 %3054, %v3102_v4  }
  0x12   :  { %2505 = vmatmul.mubr.f32.gmra.mrb[2].mxu0 %v119_v35 }
  0x13   :  { %2507 = vmatprep.mubr.msk.f32.mxu0 %vm3067_vm1, %v3068_v3 }
  0x14   :  { %595 = vperm.xlu1 %3055, %v3114_v9  }
  0x15   :  { %1169 = vrot.lane.b32.xlu0 %v3102_v4, %s3072_s18 }
  0x16   :  { %2508 = vmatmul.mubr.f32.gmra.mrb[4].mxu0 %v129_v37  ;;  %v3073_v37 = vmov 66  }
  0x17   :  { %2514 = vmatprep.mubr.msk.f32.mxu0 %vm3067_vm1, %v3068_v3  ;;  %3057 = vset.pattern.permute.xlu0 %v3073_v37 }
  0x18   :  { %1171 = vrot.lane.b32.xlu1 %v3109_v8, %s3072_s18 }
  0x19   :  { %1173 = vrot.lane.b32.xlu0 %v3114_v9, %s3072_s18  ;;  %3056 = vset.pattern.permute.xlu1 %v3073_v37 }
  0x1a   :  { %2515 = vmatmul.mubr.f32.vlgmr.msra.gmra.mrb[0].mxu0 %v3116_v11 }
  0x1b   :  { %2517 = vmatprep.mubr.msk.f32.mxu0 %vm3067_vm1, %v3068_v3  ;;  %2853 = vmatpush3.bf16.msra.mxu0 %v2852_v38  ;;  %v3074_v38 = vmov 67  }
  0x1c   :  { %2854 = vmatprep.subr.bf16.mxu0 %v3066_v0  ;;  %2322 = vperm.xlu1 %3056, %v3102_v4  }
  0x1d   :  { %2326 = vperm.xlu0 %3057, %v3109_v8  }
  0x1e   :  { %2518 = vmatmul.mubr.f32.gmra.mrb[2].mxu0 %v3126_v17 }
  0x1f   :  { %2520 = vmatprep.mubr.msk.f32.mxu0 %vm3067_vm1, %v3068_v3 }
  0x20   :  { %2330 = vperm.xlu1 %3056, %v3114_v9  }
  0x21   :  { %3059 = vset.pattern.permute.xlu0 %v3074_v38 }
  0x22   :  { %2521 = vmatmul.mubr.f32.gmra.mrb[4].mxu0 %v3132_v19  ;;  %2341 = vperm.xlu0 %3059, %v3109_v8  }
  0x23   :  { %2527 = vmatprep.mubr.msk.f32.mxu0 %vm3067_vm1, %v3068_v3 }
  0x24   :  { %3058 = vset.pattern.permute.xlu1 %v3074_v38 }
  0x25   :  { %2337 = vperm.xlu1 %3058, %v3102_v4  }
  0x26   :  { %2528 = vmatmul.mubr.f32.vlgmr.msra.gmra.mrb[0].mxu0 %v106_v18 }
  0x27   :  { %2530 = vmatprep.mubr.msk.f32.mxu0 %vm3067_vm1, %v3068_v3  ;;  %2856 = vmatpush3.bf16.msra.mxu0 %v3124_v14 }
  0x28   :  { %2857 = vmatprep.subr.bf16.mxu0 %v3066_v0 }
  0x29   :  { %2345 = vperm.xlu1 %3058, %v3114_v9  }
  0x2a   :  { %2531 = vmatmul.mubr.f32.gmra.mrb[2].mxu0 %v116_v20 }
  0x2b   :  { %2533 = vmatprep.mubr.msk.f32.mxu0 %vm3067_vm1, %v3068_v3 }
  0x2e   :  { %2534 = vmatmul.mubr.f32.gmra.mrb[4].mxu0 %v126_v24 }
  0x2f   :  { %2540 = vmatprep.mubr.msk.f32.mxu0 %vm3067_vm1, %v3068_v3 }
  0x32   :  { %2541 = vmatmul.mubr.f32.vlgmr.msra.gmra.mrb[0].mxu0 %v107_v23 }
  0x33   :  { %2543 = vmatprep.mubr.msk.f32.mxu0 %vm3067_vm1, %v3068_v3  ;;  %2859 = vmatpush3.bf16.msra.mxu0 %v2858_v39 }
  0x34   :  { %2860 = vmatprep.subr.bf16.mxu0 %v3066_v0 }
  0x36   :  { %2544 = vmatmul.mubr.f32.gmra.mrb[2].mxu0 %v117_v25 }
  0x37   :  { %2546 = vmatprep.mubr.msk.f32.mxu0 %vm3067_vm1, %v3068_v3 }
  0x3a   :  { %2547 = vmatmul.mubr.f32.gmra.mrb[4].mxu0 %v127_v29 }
  0x3b   :  { %2553 = vmatprep.mubr.msk.f32.mxu0 %vm3067_vm1, %v3068_v3 }
  0x3e   :  { %2554 = vmatmul.mubr.f32.vlgmr.msra.gmra.mrb[0].mxu0 %v3116_v11 }
  0x3f   :  { %2556 = vmatprep.mubr.msk.f32.mxu0 %vm3067_vm1, %v3068_v3  ;;  %2862 = vmatpush3.bf16.msra.mxu0 %v3124_v14 }
  0x40   :  { %2881 = vmatprep.subr.bf16.mxu0 %v3066_v0 }
  0x42   :  { %2557 = vmatmul.mubr.f32.gmra.mrb[2].mxu0 %v3126_v17 }
  0x43   :  { %2559 = vmatprep.mubr.msk.f32.mxu0 %vm3067_vm1, %v3068_v3 }
  0x46   :  { %2560 = vmatmul.mubr.f32.gmra.mrb[4].mxu0 %v3132_v19 }
  0x47   :  { %2566 = vmatprep.mubr.msk.f32.mxu0 %vm3067_vm1, %v3068_v3 }
  0x4a   :  { %2567 = vmatmul.mubr.f32.vlgmr.msra.gmra.mrb[0].mxu0 %v3116_v11 }
  0x4b   :  { %2569 = vmatprep.mubr.msk.f32.mxu0 %vm3067_vm1, %v3068_v3 }
  0x4e   :  { %2570 = vmatmul.mubr.f32.gmra.mrb[2].mxu0 %v3126_v17 }
  0x4f   :  { %2572 = vmatprep.mubr.msk.f32.mxu0 %vm3067_vm1, %v3068_v3 }
  0x52   :  { %2573 = vmatmul.mubr.f32.gmra.mrb[4].mxu0 %v3132_v19 }
  0x53   :  { %2671 = vmatprep.mubr.msk.f32.mxu0 %vm3067_vm1, %v3068_v3 }
  0x82   :  { %v19_v41 = vpop.permute.xlu0 %18  ;;  %v29_v42 = vpop.permute.xlu1 %28 }
  0x86   :  { %v24_v43 = vpop.permute.xlu0 %23  ;;  %v599_v44 = vpop.permute.xlu1 %598 }
  0x87   :  { %v605_v45 = vsel %vm604_vm2, %v599_v44, 0 }
  0x88   :  { %v3201_v48 = vand.u32 4294901760, %v605_v45 }
  0x8a   :  { %v601_v46 = vpop.permute.xlu0 %600  ;;  %v603_v52 = vpop.permute.xlu1 %602  ;;  %v3205_v54 = vsub.f32 %v605_v45, %v3201_v48 }
  0x8b   :  { %v607_v51 = vsel %vm604_vm2, %v601_v46, 0  ;;  %v609_v60 = vsel %vm604_vm2, %v603_v52, 0 }
  0x8c   :  { %v3207_v56 = vand.u32 4294901760, %v607_v51  ;;  %v681_v63 = vand.u32 4294901760, %v3205_v54  ;;  %v3214_v5 = vand.u32 4294901760, %v609_v60 }
  0x8e   :  { %v3212_v1 = vsub.f32 %v607_v51, %v3207_v56  ;;  %v3220_v16 = vsub.f32 %v609_v60, %v3214_v5  ;;  %v682_v17 = vsub.f32 %v3205_v54, %v681_v63 }
  0x8f   :  { %v592_v39 = vpop.permute.xlu1 %591 }
  0x90   :  { %v691_v15 = vand.u32 4294901760, %v3212_v1  ;;  %v701_v25 = vand.u32 4294901760, %v3220_v16  ;;  %v683_v26 = vand.u32 4294901760, %v682_v17  ;;  %v588_v40 = vpop.permute.xlu0 %587 }
  0x92   :  { %v692_v27 = vsub.f32 %v3212_v1, %v691_v15  ;;  %v702_v34 = vsub.f32 %v3220_v16, %v701_v25 }
  0x94   :  { %v693_v33 = vand.u32 4294901760, %v692_v27  ;;  %v703_v36 = vand.u32 4294901760, %v702_v34 }
 0x11d   :  { %v567_v47 = vpop.f32.mrb[0].mxu0 }
 0x11e   :  { %v2917_v49 = vadd.f32 %v567_v47, %v19_v41  ;;  %v2568_v50 = vpop.f32.mrb[1].mxu0  ;;  %v596_v41 = vpop.permute.xlu1 %595 }
 0x120   :  { %v583_v53 = vmax.f32 %v2917_v49, 0.0 }
 0x121   :  { %v573_v55 = vpop.f32.mrb[2].mxu0 }
 0x122   :  { %v612_v57 = vand.u32 4294901760, %v583_v53  ;;  %v2918_v58 = vadd.f32 %v573_v55, %v24_v43  ;;  %v2571_v59 = vpop.f32.mrb[3].mxu0  ;;  %v1172_v44 = vpop.permute.xlu1 %1171 }
 0x123   :  { %v1177_v46 = vsel %vm604_vm2, %v1172_v44, 0 }
 0x124   :  { %v711_v61 = vsub.f32 %v583_v53, %v612_v57  ;;  %v584_v62 = vmax.f32 %v2918_v58, 0.0  ;;  %v3314_v9 = vand.u32 4294901760, %v1177_v46 }
 0x125   :  { %v579_v2 = vpop.f32.mrb[4].mxu0 }
 0x126   :  { %v712_v6 = vand.u32 4294901760, %v711_v61  ;;  %v615_v7 = vand.u32 4294901760, %v584_v62  ;;  %v2919_v10 = vadd.f32 %v579_v2, %v29_v42  ;;  %v2574_v11 = vpop.f32.mrb[5].mxu0  ;;  %v1170_v42 = vpop.permute.xlu0 %1169  ;;  %v3329_v59 = vsub.f32 %v1177_v46, %v3314_v9 }
 0x127   :  { %v1175_v43 = vsel %vm604_vm2, %v1170_v42, 0 }
 0x128   :  { %v718_v12 = vsub.f32 %v584_v62, %v615_v7  ;;  %v585_v13 = vmax.f32 %v2919_v10, 0.0  ;;  %v3216_v14 = vpack.c.bf16 %v615_v7, %v612_v57  ;;  %v713_v18 = vsub.f32 %v711_v61, %v712_v6 }
 0x129   :  { %v3306_v45 = vand.u32 4294901760, %v1175_v43 }
 0x12a   :  { %v719_v19 = vand.u32 4294901760, %v718_v12  ;;  %v3225_v20 = vand.u32 4294901760, %v585_v13  ;;  %2865 = vmatpush3.bf16.msra.mxu1 %v3216_v14  ;;  %v2870_v21 = vpack.c.bf16 %v718_v12, %v711_v61  ;;  %v714_v28 = vand.u32 4294901760, %v713_v18 }
 0x12b   :  { %2579 = vmatprep.subr.mxu1 %v3068_v3  ;;  %v3312_v4 = vsub.f32 %v1175_v43, %v3306_v45 }
 0x12c   :  { %v720_v22 = vsub.f32 %v718_v12, %v719_v19  ;;  %v725_v23 = vsub.f32 %v585_v13, %v3225_v20  ;;  %v2876_v24 = vpack.c.bf16 %v719_v19, %v712_v6 }
 0x12d   :  { %v3326_v58 = vand.u32 4294901760, %v3312_v4 }
 0x12e   :  { %v721_v29 = vand.u32 4294901760, %v720_v22  ;;  %v726_v30 = vand.u32 4294901760, %v725_v23  ;;  %2580 = vmatpush3.msra.mxu1 %v3225_v20 }
 0x12f   :  { %2582 = vmatmul.mubr.f32.vlgmr.msra.gmra.mrb[0].mxu1 %v683_v26  ;;  %2866 = vmatprep.subr.bf16.mxu1 %v3066_v0  ;;  %v1252_v12 = vsub.f32 %v3312_v4, %v3326_v58 }
 0x130   :  { %v727_v31 = vsub.f32 %v725_v23, %v726_v30  ;;  %2584 = vmatprep.mubr.msk.f32.mxu1 %vm3067_vm1, %v3068_v3  ;;  %v2867_v32 = vpack.c.bf16 %v721_v29, %v714_v28 }
 0x131   :  { %v1253_v26 = vand.u32 4294901760, %v1252_v12 }
 0x132   :  { %2868 = vmatpush3.bf16.msra.mxu1 %v2867_v32  ;;  %v728_v35 = vand.u32 4294901760, %v727_v31 }
 0x133   :  { %2585 = vmatmul.mubr.f32.gmra.mrb[2].mxu1 %v693_v33  ;;  %2594 = vmatprep.subr.mxu1 %v3068_v3 }
 0x134   :  { %2587 = vmatprep.mubr.msk.f32.mxu1 %vm3067_vm1, %v3068_v3 }
 0x136   :  { %2595 = vmatpush3.msra.mxu1 %v728_v35 }
 0x137   :  { %2588 = vmatmul.mubr.f32.gmra.mrb[4].mxu1 %v703_v36  ;;  %2869 = vmatprep.subr.bf16.mxu1 %v3066_v0 }
 0x138   :  { %2596 = vmatprep.mubr.msk.f32.mxu1 %vm3067_vm1, %v3068_v3 }
 0x13b   :  { %2597 = vmatmul.mubr.f32.vlgmr.msra.gmra.mrb[0].mxu1 %v3201_v48 }
 0x13c   :  { %2871 = vmatpush3.bf16.msra.mxu1 %v2870_v21  ;;  %2599 = vmatprep.mubr.msk.f32.mxu1 %vm3067_vm1, %v3068_v3 }
 0x13d   :  { %2609 = vmatprep.subr.mxu1 %v3068_v3 }
 0x13f   :  { %2600 = vmatmul.mubr.f32.gmra.mrb[2].mxu1 %v3207_v56 }
 0x140   :  { %2610 = vmatpush3.msra.mxu1 %v725_v23  ;;  %2602 = vmatprep.mubr.msk.f32.mxu1 %vm3067_vm1, %v3068_v3 }
 0x141   :  { %2872 = vmatprep.subr.bf16.mxu1 %v3066_v0 }
 0x143   :  { %2603 = vmatmul.mubr.f32.gmra.mrb[4].mxu1 %v3214_v5 }
 0x144   :  { %2611 = vmatprep.mubr.msk.f32.mxu1 %vm3067_vm1, %v3068_v3 }
 0x147   :  { %2612 = vmatmul.mubr.f32.vlgmr.msra.gmra.mrb[0].mxu1 %v3205_v54 }
 0x148   :  { %2874 = vmatpush3.bf16.msra.mxu1 %v3216_v14  ;;  %2614 = vmatprep.mubr.msk.f32.mxu1 %vm3067_vm1, %v3068_v3 }
 0x149   :  { %2624 = vmatprep.subr.mxu1 %v3068_v3 }
 0x14b   :  { %2615 = vmatmul.mubr.f32.gmra.mrb[2].mxu1 %v3212_v1 }
 0x14c   :  { %2625 = vmatpush3.msra.mxu1 %v3225_v20  ;;  %2617 = vmatprep.mubr.msk.f32.mxu1 %vm3067_vm1, %v3068_v3 }
 0x14d   :  { %2875 = vmatprep.subr.bf16.mxu1 %v3066_v0 }
 0x14f   :  { %2618 = vmatmul.mubr.f32.gmra.mrb[4].mxu1 %v3220_v16 }
 0x150   :  { %2626 = vmatprep.mubr.msk.f32.mxu1 %vm3067_vm1, %v3068_v3 }
 0x153   :  { %2627 = vmatmul.mubr.f32.vlgmr.msra.gmra.mrb[0].mxu1 %v681_v63 }
 0x154   :  { %2877 = vmatpush3.bf16.msra.mxu1 %v2876_v24  ;;  %2629 = vmatprep.mubr.msk.f32.mxu1 %vm3067_vm1, %v3068_v3 }
 0x155   :  { %2639 = vmatprep.subr.mxu1 %v3068_v3 }
 0x157   :  { %2630 = vmatmul.mubr.f32.gmra.mrb[2].mxu1 %v691_v15 }
 0x158   :  { %2640 = vmatpush3.msra.mxu1 %v726_v30  ;;  %2632 = vmatprep.mubr.msk.f32.mxu1 %vm3067_vm1, %v3068_v3 }
 0x159   :  { %2878 = vmatprep.subr.bf16.mxu1 %v3066_v0 }
 0x15b   :  { %2633 = vmatmul.mubr.f32.gmra.mrb[4].mxu1 %v701_v25 }
 0x15c   :  { %2641 = vmatprep.mubr.msk.f32.mxu1 %vm3067_vm1, %v3068_v3 }
 0x15f   :  { %2642 = vmatmul.mubr.f32.vlgmr.msra.gmra.mrb[0].mxu1 %v3201_v48 }
 0x160   :  { %2880 = vmatpush3.bf16.msra.mxu1 %v3216_v14  ;;  %2644 = vmatprep.mubr.msk.f32.mxu1 %vm3067_vm1, %v3068_v3  ;;  %v3352_v14 = vand.u32 4294901760, %v3329_v59 }
 0x161   :  { %2654 = vmatprep.subr.mxu1 %v3068_v3 }
 0x162   :  { %v1262_v28 = vsub.f32 %v3329_v59, %v3352_v14 }
 0x163   :  { %2645 = vmatmul.mubr.f32.gmra.mrb[2].mxu1 %v3207_v56 }
 0x164   :  { %2655 = vmatpush3.msra.mxu1 %v3225_v20  ;;  %2647 = vmatprep.mubr.msk.f32.mxu1 %vm3067_vm1, %v3068_v3 }
 0x165   :  { %2899 = vmatprep.subr.bf16.mxu1 %v3066_v0 }
 0x167   :  { %2648 = vmatmul.mubr.f32.gmra.mrb[4].mxu1 %v3214_v5 }
 0x168   :  { %2656 = vmatprep.mubr.msk.f32.mxu1 %vm3067_vm1, %v3068_v3 }
 0x16b   :  { %2657 = vmatmul.mubr.f32.vlgmr.msra.gmra.mrb[0].mxu1 %v3201_v48  ;;  %v1174_v48 = vpop.permute.xlu0 %1173 }
 0x16c   :  { %2659 = vmatprep.mubr.msk.f32.mxu1 %vm3067_vm1, %v3068_v3  ;;  %v1179_v52 = vsel %vm604_vm2, %v1174_v48, 0 }
 0x16d   :  { %v3331_v60 = vand.u32 4294901760, %v1179_v52 }
 0x16f   :  { %2660 = vmatmul.mubr.f32.gmra.mrb[2].mxu1 %v3207_v56  ;;  %v3349_v13 = vsub.f32 %v1179_v52, %v3331_v60 }
 0x170   :  { %2662 = vmatprep.mubr.msk.f32.mxu1 %vm3067_vm1, %v3068_v3 }
 0x171   :  { %v3393_v31 = vand.u32 4294901760, %v3349_v13 }
 0x173   :  { %2663 = vmatmul.mubr.f32.gmra.mrb[4].mxu1 %v3214_v5  ;;  %v1272_v42 = vsub.f32 %v3349_v13, %v3393_v31 }
 0x174   :  { %2761 = vmatprep.mubr.msk.f32.mxu1 %vm3067_vm1, %v3068_v3 }
 0x175   :  { %v1273_v46 = vand.u32 4294901760, %v1272_v42 }
 0x23e   :  { %v1153_v47 = vpop.f32.mrb[0].mxu1 }
 0x23f   :  { %v3309_v49 = vadd.f32 %v1153_v47, %v588_v40  ;;  %v2658_v8 = vpop.f32.mrb[1].mxu1  ;;  %v1263_v40 = vand.u32 4294901760, %v1262_v28 }
 0x241   :  { %v1182_v50 = vand.u32 4294901760, %v3309_v49  ;;  %v1739_v51 = vmul.f32 %v3309_v49, %v3309_v49 }
 0x242   :  { %v1159_v53 = vpop.f32.mrb[2].mxu1 }
 0x243   :  { %v3321_v54 = vsub.f32 %v3309_v49, %v1182_v50  ;;  %v3323_v55 = vadd.f32 %v1159_v53, %v592_v39  ;;  %v2661_v56 = vpop.f32.mrb[3].mxu1  ;;  %v1743_v57 = vand.u32 4294901760, %v1739_v51 }
 0x245   :  { %v1185_v61 = vand.u32 4294901760, %v3323_v55  ;;  %v1740_v62 = vmul.f32 %v3323_v55, %v3323_v55  ;;  %v3336_v63 = vsub.f32 %v1739_v51, %v1743_v57  ;;  %v1282_v2 = vand.u32 4294901760, %v3321_v54 }
 0x246   :  { %v1165_v1 = vpop.f32.mrb[4].mxu1 }
 0x247   :  { %v3340_v5 = vsub.f32 %v3323_v55, %v1185_v61  ;;  %v3342_v6 = vadd.f32 %v1165_v1, %v596_v41  ;;  %v2664_v7 = vpop.f32.mrb[5].mxu1  ;;  %v3344_v10 = vpack.c.bf16 %v1185_v61, %v1182_v50  ;;  %v1746_v11 = vand.u32 4294901760, %v1740_v62 }
 0x248   :  { %v1843_v15 = vand.u32 4294901760, %v3336_v63  ;;  %v1283_v20 = vsub.f32 %v3321_v54, %v1282_v2 }
 0x249   :  { %v1741_v16 = vmul.f32 %v3342_v6, %v3342_v6  ;;  %2883 = vmatpush3.bf16.msra.mxu0 %v3344_v10  ;;  %v3358_v17 = vpack.c.bf16 %v1746_v11, %v1743_v57  ;;  %v3360_v18 = vsub.f32 %v1740_v62, %v1746_v11  ;;  %v3363_v19 = vand.u32 4294901760, %v3342_v6 }
 0x24a   :  { %2669 = vmatprep.subr.mxu0 %v3068_v3  ;;  %v1289_v21 = vand.u32 4294901760, %v3340_v5  ;;  %v1844_v23 = vsub.f32 %v3336_v63, %v1843_v15  ;;  %v1284_v33 = vand.u32 4294901760, %v1283_v20  ;;  %v2888_v48 = vpack.c.bf16 %v3340_v5, %v3321_v54 }
 0x24b   :  { %2901 = vmatpush3.bf16.msra.mxu1 %v3358_v17  ;;  %v3371_v22 = vand.u32 4294901760, %v1741_v16  ;;  %v1850_v24 = vand.u32 4294901760, %v3360_v18  ;;  %v3379_v25 = vsub.f32 %v3342_v6, %v3363_v19  ;;  %v2906_v8 = vpack.c.bf16 %v3360_v18, %v3336_v63 }
 0x24c   :  { %2759 = vmatprep.subr.mxu1 %v3068_v3  ;;  %v1290_v27 = vsub.f32 %v3340_v5, %v1289_v21  ;;  %v1845_v35 = vand.u32 4294901760, %v1844_v23 }
 0x24d   :  { %2670 = vmatpush3.msra.mxu0 %v3363_v19  ;;  %v1851_v29 = vsub.f32 %v3360_v18, %v1850_v24  ;;  %v1296_v30 = vand.u32 4294901760, %v3379_v25  ;;  %v3396_v32 = vsub.f32 %v1741_v16, %v3371_v22  ;;  %v2912_v50 = vpack.c.bf16 %v1850_v24, %v1843_v15  ;;  %v2327_v18 = vpop.permute.xlu0 %2326 }
 0x24e   :  { %2672 = vmatmul.mubr.f32.vlgmr.msra.gmra.mrb[6].mxu0 %v1253_v26  ;;  %2884 = vmatprep.subr.bf16.mxu0 %v3066_v0  ;;  %v1291_v34 = vand.u32 4294901760, %v1290_v27 }
 0x24f   :  { %2760 = vmatpush3.msra.mxu1 %v3371_v22  ;;  %2674 = vmatprep.mubr.msk.f32.mxu0 %vm3067_vm1, %v3068_v3  ;;  %v1852_v36 = vand.u32 4294901760, %v1851_v29  ;;  %v1857_v37 = vand.u32 4294901760, %v3396_v32  ;;  %v1297_v39 = vsub.f32 %v3379_v25, %v1296_v30 }
 0x250   :  { %2762 = vmatmul.mubr.f32.vlgmr.msra.gmra.mrb[6].mxu1 %v1253_v26  ;;  %v2885_v38 = vpack.c.bf16 %v1291_v34, %v1284_v33  ;;  %2902 = vmatprep.subr.bf16.mxu1 %v3066_v0 }
 0x251   :  { %2764 = vmatprep.mubr.msk.f32.mxu1 %vm3067_vm1, %v3068_v3  ;;  %v2903_v41 = vpack.c.bf16 %v1852_v36, %v1845_v35  ;;  %v1858_v43 = vsub.f32 %v3396_v32, %v1857_v37  ;;  %v1298_v44 = vand.u32 4294901760, %v1297_v39  ;;  %v2342_v26 = vpop.permute.xlu0 %2341 }
 0x252   :  { %2886 = vmatpush3.bf16.msra.mxu0 %v2885_v38 }
 0x253   :  { %2675 = vmatmul.mubr.f32.gmra.mrb[8].mxu0 %v1263_v40  ;;  %2904 = vmatpush3.bf16.msra.mxu1 %v2903_v41  ;;  %v1859_v47 = vand.u32 4294901760, %v1858_v43 }
 0x254   :  { %2684 = vmatprep.subr.mxu0 %v3068_v3  ;;  %2765 = vmatmul.mubr.f32.gmra.mrb[8].mxu1 %v1263_v40 }
 0x255   :  { %2677 = vmatprep.mubr.msk.f32.mxu0 %vm3067_vm1, %v3068_v3  ;;  %2774 = vmatprep.subr.mxu1 %v3068_v3 }
 0x256   :  { %2685 = vmatpush3.msra.mxu0 %v1298_v44  ;;  %2767 = vmatprep.mubr.msk.f32.mxu1 %vm3067_vm1, %v3068_v3 }
 0x257   :  { %2678 = vmatmul.mubr.f32.gmra.mrb[10].mxu0 %v1273_v46  ;;  %2775 = vmatpush3.msra.mxu1 %v1859_v47 }
 0x258   :  { %2768 = vmatmul.mubr.f32.gmra.mrb[10].mxu1 %v1273_v46  ;;  %2686 = vmatprep.mubr.msk.f32.mxu0 %vm3067_vm1, %v3068_v3 }
 0x259   :  { %2887 = vmatprep.subr.bf16.mxu0 %v3066_v0  ;;  %2776 = vmatprep.mubr.msk.f32.mxu1 %vm3067_vm1, %v3068_v3 }
 0x25a   :  { %2905 = vmatprep.subr.bf16.mxu1 %v3066_v0 }
 0x25b   :  { %2687 = vmatmul.mubr.f32.vlgmr.msra.gmra.mrb[6].mxu0 %v3306_v45 }
 0x25c   :  { %2889 = vmatpush3.bf16.msra.mxu0 %v2888_v48  ;;  %2777 = vmatmul.mubr.f32.vlgmr.msra.gmra.mrb[6].mxu1 %v3306_v45 }
 0x25d   :  { %2907 = vmatpush3.bf16.msra.mxu1 %v2906_v8  ;;  %2689 = vmatprep.mubr.msk.f32.mxu0 %vm3067_vm1, %v3068_v3 }
 0x25e   :  { %2699 = vmatprep.subr.mxu0 %v3068_v3  ;;  %2779 = vmatprep.mubr.msk.f32.mxu1 %vm3067_vm1, %v3068_v3 }
 0x25f   :  { %2690 = vmatmul.mubr.f32.gmra.mrb[8].mxu0 %v3314_v9  ;;  %2789 = vmatprep.subr.mxu1 %v3068_v3 }
 0x260   :  { %2700 = vmatpush3.msra.mxu0 %v3379_v25  ;;  %2780 = vmatmul.mubr.f32.gmra.mrb[8].mxu1 %v3314_v9 }
 0x261   :  { %2790 = vmatpush3.msra.mxu1 %v3396_v32  ;;  %2692 = vmatprep.mubr.msk.f32.mxu0 %vm3067_vm1, %v3068_v3 }
 0x262   :  { %2782 = vmatprep.mubr.msk.f32.mxu1 %vm3067_vm1, %v3068_v3  ;;  %2890 = vmatprep.subr.bf16.mxu0 %v3066_v0 }
 0x263   :  { %2693 = vmatmul.mubr.f32.gmra.mrb[10].mxu0 %v3331_v60  ;;  %2908 = vmatprep.subr.bf16.mxu1 %v3066_v0 }
 0x264   :  { %2783 = vmatmul.mubr.f32.gmra.mrb[10].mxu1 %v3331_v60  ;;  %2701 = vmatprep.mubr.msk.f32.mxu0 %vm3067_vm1, %v3068_v3 }
 0x265   :  { %2791 = vmatprep.mubr.msk.f32.mxu1 %vm3067_vm1, %v3068_v3 }
 0x267   :  { %2702 = vmatmul.mubr.f32.vlgmr.msra.gmra.mrb[6].mxu0 %v3312_v4 }
 0x268   :  { %2892 = vmatpush3.bf16.msra.mxu0 %v3344_v10  ;;  %2792 = vmatmul.mubr.f32.vlgmr.msra.gmra.mrb[6].mxu1 %v3312_v4  ;;  %v2894_v4 = vpack.c.bf16 %v1289_v21, %v1282_v2 }
 0x269   :  { %2910 = vmatpush3.bf16.msra.mxu1 %v3358_v17  ;;  %2704 = vmatprep.mubr.msk.f32.mxu0 %vm3067_vm1, %v3068_v3 }
 0x26a   :  { %2714 = vmatprep.subr.mxu0 %v3068_v3  ;;  %2794 = vmatprep.mubr.msk.f32.mxu1 %vm3067_vm1, %v3068_v3 }
 0x26b   :  { %2705 = vmatmul.mubr.f32.gmra.mrb[8].mxu0 %v3329_v59  ;;  %2804 = vmatprep.subr.mxu1 %v3068_v3 }
 0x26c   :  { %2715 = vmatpush3.msra.mxu0 %v3363_v19  ;;  %2795 = vmatmul.mubr.f32.gmra.mrb[8].mxu1 %v3329_v59 }
 0x26d   :  { %2805 = vmatpush3.msra.mxu1 %v3371_v22  ;;  %2707 = vmatprep.mubr.msk.f32.mxu0 %vm3067_vm1, %v3068_v3 }
 0x26e   :  { %2797 = vmatprep.mubr.msk.f32.mxu1 %vm3067_vm1, %v3068_v3  ;;  %2893 = vmatprep.subr.bf16.mxu0 %v3066_v0 }
 0x26f   :  { %2708 = vmatmul.mubr.f32.gmra.mrb[10].mxu0 %v3349_v13  ;;  %2911 = vmatprep.subr.bf16.mxu1 %v3066_v0 }
 0x270   :  { %2798 = vmatmul.mubr.f32.gmra.mrb[10].mxu1 %v3349_v13  ;;  %2716 = vmatprep.mubr.msk.f32.mxu0 %vm3067_vm1, %v3068_v3 }
 0x271   :  { %2806 = vmatprep.mubr.msk.f32.mxu1 %vm3067_vm1, %v3068_v3 }
 0x273   :  { %2717 = vmatmul.mubr.f32.vlgmr.msra.gmra.mrb[6].mxu0 %v3326_v58 }
 0x274   :  { %2895 = vmatpush3.bf16.msra.mxu0 %v2894_v4  ;;  %2807 = vmatmul.mubr.f32.vlgmr.msra.gmra.mrb[6].mxu1 %v3326_v58 }
 0x275   :  { %2913 = vmatpush3.bf16.msra.mxu1 %v2912_v50  ;;  %2719 = vmatprep.mubr.msk.f32.mxu0 %vm3067_vm1, %v3068_v3 }
 0x276   :  { %2729 = vmatprep.subr.mxu0 %v3068_v3  ;;  %2809 = vmatprep.mubr.msk.f32.mxu1 %vm3067_vm1, %v3068_v3 }
 0x277   :  { %2720 = vmatmul.mubr.f32.gmra.mrb[8].mxu0 %v3352_v14  ;;  %2819 = vmatprep.subr.mxu1 %v3068_v3 }
 0x278   :  { %2730 = vmatpush3.msra.mxu0 %v1296_v30  ;;  %2810 = vmatmul.mubr.f32.gmra.mrb[8].mxu1 %v3352_v14 }
 0x279   :  { %2820 = vmatpush3.msra.mxu1 %v1857_v37  ;;  %2722 = vmatprep.mubr.msk.f32.mxu0 %vm3067_vm1, %v3068_v3 }
 0x27a   :  { %2812 = vmatprep.mubr.msk.f32.mxu1 %vm3067_vm1, %v3068_v3  ;;  %2896 = vmatprep.subr.bf16.mxu0 %v3066_v0 }
 0x27b   :  { %2723 = vmatmul.mubr.f32.gmra.mrb[10].mxu0 %v3393_v31  ;;  %2914 = vmatprep.subr.bf16.mxu1 %v3066_v0 }
 0x27c   :  { %2813 = vmatmul.mubr.f32.gmra.mrb[10].mxu1 %v3393_v31  ;;  %2731 = vmatprep.mubr.msk.f32.mxu0 %vm3067_vm1, %v3068_v3 }
 0x27d   :  { %2821 = vmatprep.mubr.msk.f32.mxu1 %vm3067_vm1, %v3068_v3 }
 0x27f   :  { %2732 = vmatmul.mubr.f32.vlgmr.msra.gmra.mrb[6].mxu0 %v3306_v45 }
 0x280   :  { %2898 = vmatpush3.bf16.msra.mxu0 %v3344_v10  ;;  %2822 = vmatmul.mubr.f32.vlgmr.msra.gmra.mrb[6].mxu1 %v3306_v45 }
 0x281   :  { %2916 = vmatpush3.bf16.msra.mxu1 %v3358_v17  ;;  %2734 = vmatprep.mubr.msk.f32.mxu0 %vm3067_vm1, %v3068_v3 }
 0x282   :  { %2744 = vmatprep.subr.mxu0 %v3068_v3  ;;  %2824 = vmatprep.mubr.msk.f32.mxu1 %vm3067_vm1, %v3068_v3 }
 0x283   :  { %2735 = vmatmul.mubr.f32.gmra.mrb[8].mxu0 %v3314_v9  ;;  %2834 = vmatprep.subr.mxu1 %v3068_v3 }
 0x284   :  { %2745 = vmatpush3.msra.mxu0 %v3363_v19  ;;  %2825 = vmatmul.mubr.f32.gmra.mrb[8].mxu1 %v3314_v9 }
 0x285   :  { %2835 = vmatpush3.msra.mxu1 %v3371_v22  ;;  %2737 = vmatprep.mubr.msk.f32.mxu0 %vm3067_vm1, %v3068_v3 }
 0x286   :  { %2827 = vmatprep.mubr.msk.f32.mxu1 %vm3067_vm1, %v3068_v3 }
 0x287   :  { %2738 = vmatmul.mubr.f32.gmra.mrb[10].mxu0 %v3331_v60 }
 0x288   :  { %2828 = vmatmul.mubr.f32.gmra.mrb[10].mxu1 %v3331_v60  ;;  %2746 = vmatprep.mubr.msk.f32.mxu0 %vm3067_vm1, %v3068_v3 }
 0x289   :  { %2836 = vmatprep.mubr.msk.f32.mxu1 %vm3067_vm1, %v3068_v3 }
 0x28b   :  { %2747 = vmatmul.mubr.f32.vlgmr.msra.gmra.mrb[6].mxu0 %v3306_v45 }
 0x28c   :  { %2837 = vmatmul.mubr.f32.vlgmr.msra.gmra.mrb[6].mxu1 %v3306_v45  ;;  %2749 = vmatprep.mubr.msk.f32.mxu0 %vm3067_vm1, %v3068_v3 }
 0x28d   :  { %2839 = vmatprep.mubr.msk.f32.mxu1 %vm3067_vm1, %v3068_v3 }
 0x28f   :  { %2750 = vmatmul.mubr.f32.gmra.mrb[8].mxu0 %v3314_v9 }
 0x290   :  { %2840 = vmatmul.mubr.f32.gmra.mrb[8].mxu1 %v3314_v9  ;;  %2752 = vmatprep.mubr.msk.f32.mxu0 %vm3067_vm1, %v3068_v3 }
 0x291   :  { %2842 = vmatprep.mubr.msk.f32.mxu1 %vm3067_vm1, %v3068_v3  ;;  %v2323_v3 = vpop.permute.xlu1 %2322 }
 0x293   :  { %2753 = vmatmul.mubr.f32.gmra.mrb[10].mxu0 %v3331_v60 }
 0x294   :  { %2843 = vmatmul.mubr.f32.gmra.mrb[10].mxu1 %v3331_v60 }
 0x295   :  { %v2331_v15 = vpop.permute.xlu1 %2330 }
 0x299   :  { %v2338_v20 = vpop.permute.xlu1 %2337 }
 0x35e   :  { %v1723_v0 = vpop.f32.mrb[6].mxu0 }
 0x35f   :  { %v2300_v45 = vmul.f32 %v1723_v0, %v1723_v0  ;;  %v2748_v51 = vpop.f32.mrb[7].mxu0  ;;  %v2284_v52 = vpop.f32.mrb[6].mxu1  ;;  %v2309_v16 = vsub.f32 %v3309_v49, %v1723_v0 }
 0x360   :  { %v2838_v53 = vpop.f32.mrb[7].mxu1 }
 0x361   :  { %v2303_v54 = vsub.f32 %v2284_v52, %v2300_v45 }
 0x362   :  { %v1729_v56 = vpop.f32.mrb[8].mxu0 }
 0x363   :  { %v2306_v57 = vmax.f32 %v2303_v54, 0.0  ;;  %v2301_v58 = vmul.f32 %v1729_v56, %v1729_v56  ;;  %v2751_v9 = vpop.f32.mrb[9].mxu0  ;;  %v2290_v59 = vpop.f32.mrb[8].mxu1  ;;  %v2310_v21 = vsub.f32 %v3323_v55, %v1729_v56 }
 0x364   :  { %v2841_v61 = vpop.f32.mrb[9].mxu1  ;;  %v2346_v55 = vpop.permute.xlu1 %2345 }
 0x365   :  { %v2312_v62 = vadd.f32 1e-05, %v2306_v57  ;;  %v2304_v63 = vsub.f32 %v2290_v59, %v2301_v58 }
 0x366   :  { %v1735_v1 = vpop.f32.mrb[10].mxu0 }
 0x367   :  { %3060 = vrsqrt.f32 %v2312_v62  ;;  %v2307_v2 = vmax.f32 %v2304_v63, 0.0  ;;  %v2302_v5 = vmul.f32 %v1735_v1, %v1735_v1  ;;  %v2754_v60 = vpop.f32.mrb[11].mxu0  ;;  %v2296_v7 = vpop.f32.mrb[10].mxu1  ;;  %v2311_v27 = vsub.f32 %v3342_v6, %v1735_v1 }
 0x368   :  { %v2844_v10 = vpop.f32.mrb[11].mxu1 }
 0x369   :  { %v2313_v11 = vadd.f32 1e-05, %v2307_v2  ;;  %v2305_v12 = vsub.f32 %v2296_v7, %v2302_v5 }
 0x36b   :  { %3062 = vrsqrt.f32 %v2313_v11  ;;  %v2308_v13 = vmax.f32 %v2305_v12, 0.0 }
 0x36d   :  { %v2314_v14 = vadd.f32 1e-05, %v2308_v13 }
 0x36f   :  { %3064 = vrsqrt.f32 %v2314_v14 }
 0x371   :  { %v3061_v17 = vpop.eup %3060 }
 0x372   :  { %v2318_v19 = vmul.f32 %v3061_v17, %v2309_v16 }
 0x374   :  { %v2333_v22 = vmul.f32 %v2323_v3, %v2318_v19 }
 0x375   :  { %v3063_v23 = vpop.eup %3062 }
 0x376   :  { %v2348_v24 = vadd.f32 %v2338_v20, %v2333_v22  ;;  %v2319_v25 = vmul.f32 %v3063_v23, %v2310_v21 }
 0x378   :  { %2352 = vst.msk [vmem:[%s3566_s2] sm:$0xff] %vm2351_vm3, %v2348_v24  ;;  %v2334_v28 = vmul.f32 %v2327_v18, %v2319_v25 }
 0x379   :  { %v3065_v49 = vpop.eup %3064 }
 0x37a   :  { %v2320_v29 = vmul.f32 %v3065_v49, %v2311_v27  ;;  %v2349_v30 = vadd.f32 %v2342_v26, %v2334_v28 }
 0x37c   :  { %v2335_v31 = vmul.f32 %v2331_v15, %v2320_v29  ;;  %2353 = vst.msk [vmem:[%s3566_s2 + $0x8] sm:$0xff] %vm2351_vm3, %v2349_v30 }
 0x37e   :  { %v2350_v32 = vadd.f32 %v2346_v55, %v2335_v31 }
 0x380   :  { %2354 = vst.msk [vmem:[%s3566_s2 + $0x10] sm:$0xff] %vm2351_vm3, %v2350_v32 }

</bundles_post_ra>
